<compile_context>
chip_gen: v5e
topology: v5e:2x2
jax: 0.10.0
libtpu: 0.0.40
codegen_flags: <defaults>
</compile_context>

<pallas_src>
import jax
import jax.numpy as jnp
from jax.experimental import pallas as pl
from jax.experimental.pallas import tpu as pltpu


def p3_kernel(patches_ref, w_ref, pos_ref, out_ref):
    # patches_ref: (1, N+1, patch_dim) one batch element; row 0 is the zero
    #              "cls patch" row, so the projection contributes 0 there.
    # w_ref:       (patch_dim, dim)    linear weight (transposed); same block
    #                                  every step -> VMEM-resident.
    # pos_ref:     (N+1, dim)          row 0 = cls_token + pos_emb[0] (no b),
    #                                  rows 1.. = pos_emb[1:] + b; resident,
    #                                  shared across batch (no tile).
    # out_ref:     (1, N+1, dim)       full P3 output rows for this batch elt.
    proj = jnp.dot(patches_ref[0], w_ref[...],
                   preferred_element_type=jnp.float32)       # single MXU issue
    out_ref[0] = (proj + pos_ref[...]).astype(out_ref.dtype)


def p3_forward(x, w, b, pos_emb, cls_token, patch_size):
    """x: (B, C, H, W) float32. Returns (B, num_patches + 1, dim)."""
    B, C, H, W = x.shape
    p = patch_size
    h, wn = H // p, W // p
    N = h * wn
    patch_dim = p * p * C
    dim = w.shape[1]
    S = N + 1  # sequence length incl. cls row

    # rearrange 'b c (h p1) (w p2) -> b (h w) (p1 p2 c)'  (XLA glue) and
    # prepend one zero patch row per batch (fuses into the same copy).
    patches = x.reshape(B, C, h, p, wn, p)            # b c h p1 w p2
    patches = patches.transpose(0, 2, 4, 3, 5, 1)     # b h w p1 p2 c
    patches = patches.reshape(B, N, patch_dim)
    patches = jnp.pad(patches, ((0, 0), (1, 0), (0, 0)))   # (B, S, patch_dim)

    # Batch-independent fused bias operand: row 0 carries the cls head
    # (cls_token + pos_emb[:,0], deliberately WITHOUT the Linear bias),
    # rows 1.. carry pos_emb[1:] + Linear bias.  Tiny one-time precompute.
    head_row = cls_token.reshape(1, dim) + pos_emb[0, :1, :]     # (1, dim)
    body_rows = pos_emb[0, 1:, :] + b[None, :]                   # (N, dim)
    pos_full = jnp.concatenate([head_row, body_rows], axis=0)    # (S, dim)

    flops = 2 * B * S * patch_dim * dim
    bytes_accessed = 4 * (B * S * patch_dim        # patches in
                          + patch_dim * dim        # weight in (once)
                          + S * dim                # fused pos/bias in (once)
                          + B * S * dim)           # output

    return pl.pallas_call(
        p3_kernel,
        out_shape=jax.ShapeDtypeStruct((B, S, dim), jnp.float32),
        grid_spec=pl.GridSpec(
            grid=(B,),
            in_specs=[
                pl.BlockSpec((1, S, patch_dim), lambda bi: (bi, 0, 0)),
                pl.BlockSpec((patch_dim, dim), lambda bi: (0, 0)),   # resident
                pl.BlockSpec((S, dim), lambda bi: (0, 0)),           # resident
            ],
            out_specs=pl.BlockSpec((1, S, dim), lambda bi: (bi, 0, 0)),
        ),
        compiler_params=pltpu.CompilerParams(
            dimension_semantics=("parallel",)),   # batch steps across v7x TCs
        cost_estimate=pl.CostEstimate(
            flops=flops, transcendentals=0, bytes_accessed=bytes_accessed),
    )(patches, w, pos_full)


def p3_reference(x, w, b, pos_emb, cls_token, patch_size):
    B, C, H, W = x.shape
    p = patch_size
    h, wn = H // p, W // p
    patches = x.reshape(B, C, h, p, wn, p).transpose(0, 2, 4, 3, 5, 1)
    patches = patches.reshape(B, h * wn, p * p * C)
    proj = patches @ w + b
    cls = jnp.broadcast_to(cls_token, (B, 1, w.shape[1]))
    out = jnp.concatenate([cls, proj], axis=1)
    return out + pos_emb


if __name__ == "__main__":
    # Module config (small): image_size=16, patch_size=4, channels=4, dim=32
    image_size = 16
    patch_size = 4
    channels = 4
    dim = 32
    patch_dim = patch_size * patch_size * channels          # 64
    num_patches = (image_size // patch_size) ** 2           # 16
    batch = 2

    key = jax.random.PRNGKey(0)
    kx, kw, kb, kpos, kcls = jax.random.split(key, 5)

    x = jax.random.normal(kx, (batch, channels, image_size, image_size),
                          dtype=jnp.float32)
    # nn.Linear(patch_dim, dim): weight (dim, patch_dim), bias (dim,).
    # Stored transposed here as (patch_dim, dim) for y = x @ W + b.
    w = jax.random.normal(kw, (patch_dim, dim), dtype=jnp.float32) * 0.02
    b = jax.random.normal(kb, (dim,), dtype=jnp.float32) * 0.02
    pos_emb = jax.random.normal(kpos, (1, num_patches + 1, dim),
                                dtype=jnp.float32)
    cls_token = jax.random.normal(kcls, (1, 1, dim), dtype=jnp.float32)

    out = p3_forward(x, w, b, pos_emb, cls_token, patch_size)
    out = jax.block_until_ready(out)

    ref = p3_reference(x, w, b, pos_emb, cls_token, patch_size)
    assert out.shape == (batch, num_patches + 1, dim)
    assert jnp.allclose(out, ref, atol=1e-5, rtol=1e-5)

    print("KERNEL_OK")
</pallas_src>

<mosaic_0001>
module attributes {stable_mosaic.version = 11 : i64} {
  func.func @p3_kernel(%arg0: i32, %arg1: memref<1x17x64xf32, #tpu.memory_space<vmem>>, %arg2: memref<64x32xf32, #tpu.memory_space<vmem>>, %arg3: memref<17x32xf32, #tpu.memory_space<vmem>>, %arg4: memref<1x17x32xf32, #tpu.memory_space<vmem>>) attributes {dimension_semantics = [#tpu.dimension_semantics<parallel>], iteration_bounds = array<i64: 2>, scalar_prefetch = 0 : i64, scratch_operands = 0 : i64, tpu.core_type = #tpu.core_type<tc>, window_params = [{transform_indices = @transform_0, window_bounds = array<i64: 1, 17, 64>}, {pipeline_mode = #tpu.pipeline_mode<synchronous>, transform_indices = @transform_1, window_bounds = array<i64: 64, 32>}, {pipeline_mode = #tpu.pipeline_mode<synchronous>, transform_indices = @transform_2, window_bounds = array<i64: 17, 32>}, {transform_indices = @transform_3, window_bounds = array<i64: 1, 17, 32>}]} {
    %c0 = arith.constant 0 : index
    %c0_0 = arith.constant 0 : index
    %c0_1 = arith.constant 0 : index
    %0 = vector.load %arg1[%c0, %c0_0, %c0_1] : memref<1x17x64xf32, #tpu.memory_space<vmem>>, vector<1x17x64xf32>
    %1 = vector.shape_cast %0 : vector<1x17x64xf32> to vector<17x64xf32>
    %c0_2 = arith.constant 0 : index
    %c0_3 = arith.constant 0 : index
    %2 = vector.load %arg2[%c0_2, %c0_3] : memref<64x32xf32, #tpu.memory_space<vmem>>, vector<64x32xf32>
    %cst = arith.constant dense<0.000000e+00> : vector<17x32xf32>
    %3 = tpu.matmul %1, %2, %cst {dimension_numbers = #tpu.dot_dimension_numbers<[1], [0], [0], [1], [0, 0, 1, 1], [], []>} : vector<17x64xf32>, vector<64x32xf32>, vector<17x32xf32> -> vector<17x32xf32>
    %c0_4 = arith.constant 0 : index
    %c0_5 = arith.constant 0 : index
    %4 = vector.load %arg3[%c0_4, %c0_5] : memref<17x32xf32, #tpu.memory_space<vmem>>, vector<17x32xf32>
    %5 = arith.addf %3, %4 : vector<17x32xf32>
    %c0_6 = arith.constant 0 : index
    %c0_7 = arith.constant 0 : index
    %c0_8 = arith.constant 0 : index
    %6 = vector.load %arg4[%c0_6, %c0_7, %c0_8] : memref<1x17x32xf32, #tpu.memory_space<vmem>>, vector<1x17x32xf32>
    %7 = vector.shape_cast %6 : vector<1x17x32xf32> to vector<17x32xf32>
    %8 = vector.shape_cast %5 : vector<17x32xf32> to vector<1x17x32xf32>
    tpu.vector_store %arg4[%c0_6, %c0_7, %c0_8], %8 {strides = array<i32>} : memref<1x17x32xf32, #tpu.memory_space<vmem>>, vector<1x17x32xf32>,
    return
  }
  func.func @transform_0(%arg0: i32) -> (i32, i32, i32) {
    %c0_i32 = arith.constant 0 : i32
    %c0_i32_0 = arith.constant 0 : i32
    %c0_i32_1 = arith.constant 0 : i32
    return %arg0, %c0_i32, %c0_i32_0 : i32, i32, i32
  }
  func.func @transform_1(%arg0: i32) -> (i32, i32) {
    %c0_i32 = arith.constant 0 : i32
    %c0_i32_0 = arith.constant 0 : i32
    %c0_i32_1 = arith.constant 0 : i32
    return %c0_i32, %c0_i32_0 : i32, i32
  }
  func.func @transform_2(%arg0: i32) -> (i32, i32) {
    %c0_i32 = arith.constant 0 : i32
    %c0_i32_0 = arith.constant 0 : i32
    %c0_i32_1 = arith.constant 0 : i32
    return %c0_i32, %c0_i32_0 : i32, i32
  }
  func.func @transform_3(%arg0: i32) -> (i32, i32, i32) {
    %c0_i32 = arith.constant 0 : i32
    %c0_i32_0 = arith.constant 0 : i32
    %c0_i32_1 = arith.constant 0 : i32
    return %arg0, %c0_i32, %c0_i32_0 : i32, i32, i32
  }
}

</mosaic_0001>

<bundles_post_ra>
// kernel: tpu_custom_call.1
= control target key start
LH: loop header
LB: loop body
LE: loop exit
PB: predicated region body
PF: predicated region fallthrough
CT: control target
= control target key end

     0   :  { %s346_s12 = smov 0   ;;  %s403_s0 = inlined_call_operand.vmem [shape: f32[2,17,64], index: 0, kind: input, shape index: {}]   ;;  %s404_s1 = inlined_call_operand.vmem [shape: f32[64,32], index: 1, kind: input, shape index: {}]   ;;  %s405_s2 = inlined_call_operand.vmem [shape: f32[17,32], index: 2, kind: input, shape index: {}]   ;;  %s406_s3 = inlined_call_operand.vmem [shape: f32[2,17,32], index: 3, kind: output, shape index: {}]  }
   0x1 LB: > { %s281_s13 = sadd.s32 4294967295, %s324_s12   ;;  %p285_p0 = scmp.ge.s32.totalorder %s324_s12, 1  ;;  %s324_s12 = sphi %s346_s12, %s13_s12  }
   0x2   : > { %p137_p1 = scmp.lt.s32.totalorder %s324_s12, 3 }
   0x4   : > { %p138_p2 = pnand %p285_p0, %p137_p1 }
   0x5   : > { %p161_p3 = scmp.lt.s32.totalorder (!%p138_p2), %s281_s13, 1 }
   0x6   : > { %141 = sbr.rel (%p138_p2) target bundleno = 162 (0xa2), region = 32 }
   0xb   : > { %v181_v0 = vld [vmem:[%s404_s1 + $0x38] sm:$0xff]  ;;  %v180_v1 = vld [vmem:[%s404_s1 + $0x30] sm:$0xff]  ;;  %v179_v2 = vld [vmem:[%s404_s1 + $0x28] sm:$0xff]  ;;  %s408_s13 = smov (!%p161_p3, %s281_s13), 1  ;;  %vm185_vm0 = vcmask 523264   ;;  %vm221_vm1 = vcmask 261120  }
   0xc   : > { %294 = vmatpush.msra.mxu2 %v181_v0  ;;  %203 = vmatpush.msra.mxu0 %v181_v0  ;;  %v178_v3 = vld [vmem:[%s404_s1 + $0x20] sm:$0xff]  ;;  %v177_v4 = vld [vmem:[%s404_s1 + $0x18] sm:$0xff]  ;;  %s309_s24 = smul.u32 24, %s408_s13  ;;  %v176_v5 = vld [vmem:[%s404_s1 + $0x10] sm:$0xff]  ;;  %vm224_vm2 = vcmask 253952  }
   0xd   : > { %293 = vmatpush.msra.mxu1 %v181_v0  ;;  %v175_v6 = vld [vmem:[%s404_s1 + $0x8] sm:$0xff]  ;;  %v174_v7 = vld [vmem:[%s404_s1] sm:$0xff]  ;;  %v184_v17 = vld [vmem:[%s405_s2 + $0x10] sm:$0x1] }
   0xe   : > { %296 = vmatpush.msra.mxu2 %v180_v1  ;;  %204 = vmatpush.msra.mxu0 %v180_v1  ;;  %s165_s4 = scalar_lea.vmem %s403_s0, %s309_s24  ;;  %v182_v11 = vld [vmem:[%s405_s2] sm:$0xff]  ;;  %v183_v12 = vld [vmem:[%s405_s2 + $0x8] sm:$0xff]  ;;  %s170_s15 = scalar_lea.vmem %s406_s3, %s309_s24 }
   0xf   : > { %295 = vmatpush.msra.mxu1 %v180_v1  ;;  %v173_v8 = vld [vmem:[%s165_s4 + $0x10] sm:$0x1]  ;;  %v171_v9 = vld [vmem:[%s165_s4] sm:$0xff]  ;;  %v172_v10 = vld [vmem:[%s165_s4 + $0x8] sm:$0xff] }
  0x10   : > { %298 = vmatpush.msra.mxu2 %v179_v2  ;;  %205 = vmatpush.msra.mxu0 %v179_v2 }
  0x11   : > { %297 = vmatpush.msra.mxu1 %v179_v2 }
  0x12   : > { %300 = vmatpush.msra.mxu2 %v178_v3  ;;  %206 = vmatpush.msra.mxu0 %v178_v3 }
  0x13   : > { %299 = vmatpush.msra.mxu1 %v178_v3 }
  0x14   : > { %302 = vmatpush.msra.mxu2 %v177_v4  ;;  %207 = vmatpush.msra.mxu0 %v177_v4 }
  0x15   : > { %301 = vmatpush.msra.mxu1 %v177_v4 }
  0x16   : > { %304 = vmatpush.msra.mxu2 %v176_v5  ;;  %208 = vmatpush.msra.mxu0 %v176_v5 }
  0x17   : > { %303 = vmatpush.msra.mxu1 %v176_v5 }
  0x18   : > { %306 = vmatpush.msra.mxu2 %v175_v6  ;;  %209 = vmatpush.msra.mxu0 %v175_v6 }
  0x19   : > { %305 = vmatpush.msra.mxu1 %v175_v6 }
  0x1a   : > { %308 = vmatpush.msra.mxu2 %v174_v7  ;;  %210 = vmatpush.msra.mxu0 %v174_v7 }
  0x1b   : > { %290 = vmatmul.msk.f32.vlgmr.msra.gmra.mxu2 %vm185_vm0, %v173_v8  ;;  %307 = vmatpush.msra.mxu1 %v174_v7 }
  0x1c   : > { %288 = vmatmul.msk.f32.vlgmr.msra.gmra.mxu0 %vm185_vm0, %v171_v9  ;;  %289 = vmatmul.msk.f32.vlgmr.msra.gmra.mxu1 %vm185_vm0, %v172_v10 }
  0x99   : > { %v212_v13 = vpop.f32.mrf.mxu0  ;;  %v215_v14 = vpop.f32.mrf.mxu1 }
  0x9a   : > { %v213_v15 = vadd.f32 %v212_v13, %v182_v11  ;;  %v216_v16 = vadd.f32 %v215_v14, %v183_v12 }
  0x9c   : > { %222 = vst.msk [vmem:[%s170_s15] sm:$0xff] %vm221_vm1, %v213_v15 }
  0x9d   : > { %223 = vst.msk [vmem:[%s170_s15 + $0x8] sm:$0xff] %vm221_vm1, %v216_v16 }
  0x9e   : > { %v218_v18 = vpop.f32.mrf.mxu2 }
  0x9f   : > { %v219_v19 = vadd.f32 %v218_v18, %v184_v17 }
  0xa1   : > { %225 = vst.msk [vmem:[%s170_s15 + $0x10] sm:$0x1] %vm224_vm2, %v219_v19 }
  0xa2 PF: > { %s13_s12 = sadd.s32 1, %s324_s12  }
  0xa3   : > { %p10_p4 = scmp.ge.s32.totalorder %s13_s12, 4  }
  0xa5   :  { %12 = sbr.rel (!%p10_p4) target bundleno = 1 (0x1), region = 62 }

</bundles_post_ra>
